<compile_context>
chip_gen: v7x
topology: tpu7x:2x2x1
jax: 0.10.0
libtpu: 0.0.40
codegen_flags: <defaults>
</compile_context>

<pallas_src>
import math
import functools

import numpy as np
import jax
import jax.numpy as jnp
from jax.experimental import pallas as pl
from jax.experimental.pallas import tpu as pltpu


MXU_DTYPE = jnp.bfloat16          # MXU operand dtype (accumulation is always f32)
NEG_MASK = -1000000000.0          # same mask constant as the torch module


# ---------------------------------------------------------------------------
# Helpers: tiling with zero-padding fallback, compiler params.
# ---------------------------------------------------------------------------
def _round_up(x, m):
    return ((x + m - 1) // m) * m


def _tile_and_pad(dim, target, align):
    """Pick an `align`-aligned tile <= ~target and the padded dim (a multiple
    of the tile). Never degenerates to one giant unaligned tile."""
    dim_al = _round_up(dim, align)
    if dim_al <= target:
        return dim_al, dim_al                      # single (padded) tile
    t = (target // align) * align
    while t >= align:                              # exact aligned divisor: no padding
        if dim % t == 0:
            return t, dim
        t -= align
    t = (target // align) * align                  # pad up to a tile multiple
    return t, _round_up(dim, t)


def _compiler_params(semantics, vmem_bytes=None):
    kwargs = dict(dimension_semantics=semantics)
    if vmem_bytes is not None:
        # Headroom x2, floor 32 MiB, cap 64 MiB (v7x physical VMEM).
        kwargs["vmem_limit_bytes"] = int(
            min(64 * 1024 * 1024, max(32 * 1024 * 1024, 2 * vmem_bytes)))
    return pltpu.CompilerParams(**kwargs)


# ---------------------------------------------------------------------------
# Kernel 1: tiled matmul + bias (Conv1D rf=1: value projection and c_proj).
# ---------------------------------------------------------------------------
def _matmul_bias_kernel(x_ref, w_ref, b_ref, o_ref, acc_ref):
    k = pl.program_id(2)

    @pl.when(k == 0)
    def _():
        # Initialize the accumulator with the broadcast bias (no epilogue add).
        acc_ref[...] = jnp.broadcast_to(b_ref[...], acc_ref.shape).astype(jnp.float32)

    acc_ref[...] += jnp.dot(x_ref[...].astype(MXU_DTYPE),
                            w_ref[...].astype(MXU_DTYPE),
                            preferred_element_type=jnp.float32)

    @pl.when(k == pl.num_programs(2) - 1)
    def _():
        o_ref[...] = acc_ref[...].astype(o_ref.dtype)


def linear_pallas(x2d, w, b, *, tm_target=512, tn_target=512, tk_target=512):
    """x2d: (M, K), w: (K, N), b: (N,) -> (M, N); bf16 MXU, f32 accumulation."""
    M, K = x2d.shape
    Kw, N = w.shape
    assert Kw == K
    tm, Mp = _tile_and_pad(M, tm_target, 8)
    tn, Np = _tile_and_pad(N, tn_target, 128)
    tk, Kp = _tile_and_pad(K, tk_target, 128)
    if (Mp, Kp) != (M, K):
        x2d = jnp.pad(x2d, ((0, Mp - M), (0, Kp - K)))
    if (Kp, Np) != (K, N):
        w = jnp.pad(w, ((0, Kp - K), (0, Np - N)))
    if Np != N:
        b = jnp.pad(b, (0, Np - N))

    grid = (Mp // tm, Np // tn, Kp // tk)
    vmem_bytes = 4 * (2 * (tm * tk + tk * tn + tn) + 3 * tm * tn)
    out = pl.pallas_call(
        _matmul_bias_kernel,
        out_shape=jax.ShapeDtypeStruct((Mp, Np), x2d.dtype),
        grid=grid,
        in_specs=[
            pl.BlockSpec((tm, tk), lambda i, j, k: (i, k)),
            pl.BlockSpec((tk, tn), lambda i, j, k: (k, j)),
            pl.BlockSpec((1, tn), lambda i, j, k: (0, j)),
        ],
        out_specs=pl.BlockSpec((tm, tn), lambda i, j, k: (i, j)),
        scratch_shapes=[pltpu.VMEM((tm, tn), jnp.float32)],
        compiler_params=_compiler_params(("parallel", "parallel", "arbitrary"),
                                         vmem_bytes),
    )(x2d, w, b.reshape(1, Np))
    if (Mp, Np) != (M, N):
        out = out[:M, :N]
    return out


# ---------------------------------------------------------------------------
# Kernel 2: causal Conv1d (kernel size q_len) for the query_key projection.
# The q_len taps are accumulated in-kernel from a single left-padded
# activation block — no q_len-times-unfolded tensor through HBM.
# ---------------------------------------------------------------------------
def _causal_conv_kernel(xp_ref, w_ref, b_ref, o_ref):
    # xp_ref: (T + q_len - 1, E) left-padded activations for one batch row
    # w_ref : (q_len, E, tn) per-tap weights;  b_ref: (1, tn);  o_ref: (T, tn)
    q_len = w_ref.shape[0]
    t_out = o_ref.shape[0]
    acc = jnp.broadcast_to(b_ref[...], o_ref.shape).astype(jnp.float32)
    for j in range(q_len):                       # static unroll, q_len is small
        acc = acc + jnp.dot(xp_ref[j:j + t_out, :].astype(MXU_DTYPE),
                            w_ref[j].astype(MXU_DTYPE),
                            preferred_element_type=jnp.float32)
    o_ref[...] = acc.astype(o_ref.dtype)


def causal_conv1d_pallas(x, w_conv, b, *, tn_target=512):
    """x: (B, T, E); w_conv: (N, E, q_len) [torch nn.Conv1d layout]; b: (N,)
       -> (B, T, N) causal (left-padded) convolution over time."""
    B, T, E = x.shape
    N, E_w, q_len = w_conv.shape
    assert E_w == E
    tn, Np = _tile_and_pad(N, tn_target, 128)

    # (N, E, q_len) -> (q_len, E, N): one matmul-ready (E, N) matrix per tap.
    w_taps = jnp.transpose(w_conv, (2, 1, 0))
    if Np != N:
        w_taps = jnp.pad(w_taps, ((0, 0), (0, 0), (0, Np - N)))
        b = jnp.pad(b, (0, Np - N))
    x_pad = jnp.pad(x, ((0, 0), (q_len - 1, 0), (0, 0)))       # causal left pad
    Tp = T + q_len - 1

    grid = (B, Np // tn)
    vmem_bytes = 4 * (2 * (Tp * E + q_len * E * tn + tn + T * tn) + T * tn)
    # TODO(synk): for very long sequences add a time-tile grid axis (needs
    # neighbor-block handling for the q_len-1 overlap).
    out = pl.pallas_call(
        _causal_conv_kernel,
        out_shape=jax.ShapeDtypeStruct((B, T, Np), x.dtype),
        grid=grid,
        in_specs=[
            pl.BlockSpec((None, Tp, E), lambda bi, ni: (bi, 0, 0)),
            pl.BlockSpec((q_len, E, tn), lambda bi, ni: (0, 0, ni)),
            pl.BlockSpec((1, tn), lambda bi, ni: (0, ni)),
        ],
        out_specs=pl.BlockSpec((None, T, tn), lambda bi, ni: (bi, 0, ni)),
        compiler_params=_compiler_params(("parallel", "parallel"), vmem_bytes),
    )(x_pad, w_taps, b.reshape(1, Np))
    if Np != N:
        out = out[..., :N]
    return out


# ---------------------------------------------------------------------------
# Kernel 3: causal flash attention over per-head layout (B*H, T, E).
# Online softmax, causal KV-tile skipping, deferred normalization.
# ---------------------------------------------------------------------------
def _flash_attn_kernel(q_ref, k_ref, v_ref, o_ref, m_ref, l_ref, acc_ref, *, scale):
    qi = pl.program_id(1)
    ki = pl.program_id(2)
    t_q = q_ref.shape[0]
    t_k = k_ref.shape[0]

    @pl.when(ki == 0)
    def _():
        m_ref[...] = jnp.full(m_ref.shape, -jnp.inf, dtype=m_ref.dtype)
        l_ref[...] = jnp.zeros(l_ref.shape, dtype=l_ref.dtype)
        acc_ref[...] = jnp.zeros(acc_ref.shape, dtype=acc_ref.dtype)

    # Causal tile skipping: KV tiles strictly above the diagonal do no compute.
    # (Their blocks are still DMA'd by the pipeline; acceptable for now.)
    @pl.when(ki <= qi)
    def _():
        q = q_ref[...].astype(jnp.float32)
        if scale:
            # Fold 1/sqrt(E) into q (tq x E), not into the (tq, tk) score tile.
            q = q * (1.0 / math.sqrt(q.shape[-1]))
        s = jax.lax.dot_general(q.astype(MXU_DTYPE), k_ref[...].astype(MXU_DTYPE),
                                (((1,), (1,)), ((), ())),
                                preferred_element_type=jnp.float32)       # (tq, tk)
        row = qi * t_q + jax.lax.broadcasted_iota(jnp.int32, s.shape, 0)
        col = ki * t_k + jax.lax.broadcasted_iota(jnp.int32, s.shape, 1)
        s = jnp.where(col <= row, s, NEG_MASK)

        m_prev = m_ref[...]
        m_new = jnp.maximum(m_prev, jnp.max(s, axis=-1, keepdims=True))
        alpha = jnp.exp(m_prev - m_new)                                   # f32 (v5e-safe)
        e = jnp.exp(s - m_new)
        l_ref[...] = alpha * l_ref[...] + jnp.sum(e, axis=-1, keepdims=True)
        acc_ref[...] = alpha * acc_ref[...] + jnp.dot(
            e.astype(MXU_DTYPE), v_ref[...].astype(MXU_DTYPE),
            preferred_element_type=jnp.float32)
        m_ref[...] = m_new

    # Last KV tile that can contribute to this Q tile: deferred normalization.
    @pl.when(ki == qi)
    def _():
        o_ref[...] = (acc_ref[...] *
                      pl.reciprocal(l_ref[...], approx=True)).astype(o_ref.dtype)


def flash_attention_pallas(q, k, v, *, scale, block_t_target=128):
    """q, k, v: (B*H, T, E) per-head layout -> (B*H, T, E) causal attention."""
    BH, T, E = q.shape
    t_blk, Tp = _tile_and_pad(T, block_t_target, 8)           # tq == tk == t_blk
    if Tp != T:
        # Zero-pad time; padded key columns are killed by the causal mask and
        # padded query rows are sliced off below.
        pad = ((0, 0), (0, Tp - T), (0, 0))
        q = jnp.pad(q, pad)
        k = jnp.pad(k, pad)
        v = jnp.pad(v, pad)
    n_t = Tp // t_blk
    grid = (BH, n_t, n_t)

    vmem_bytes = 4 * (2 * 4 * t_blk * E + t_blk * (E + 2))
    out = pl.pallas_call(
        functools.partial(_flash_attn_kernel, scale=scale),
        out_shape=jax.ShapeDtypeStruct((BH, Tp, E), q.dtype),
        grid=grid,
        in_specs=[
            pl.BlockSpec((None, t_blk, E), lambda b, qi, ki: (b, qi, 0)),
            pl.BlockSpec((None, t_blk, E), lambda b, qi, ki: (b, ki, 0)),
            pl.BlockSpec((None, t_blk, E), lambda b, qi, ki: (b, ki, 0)),
        ],
        out_specs=pl.BlockSpec((None, t_blk, E), lambda b, qi, ki: (b, qi, 0)),
        scratch_shapes=[
            pltpu.VMEM((t_blk, 1), jnp.float32),   # running row max
            pltpu.VMEM((t_blk, 1), jnp.float32),   # running softmax denom
            pltpu.VMEM((t_blk, E), jnp.float32),   # unnormalized output accumulator
        ],
        compiler_params=_compiler_params(("parallel", "parallel", "arbitrary"),
                                         vmem_bytes),
    )(q, k, v)
    if Tp != T:
        out = out[:, :T, :]
    return out


# ---------------------------------------------------------------------------
# Full forward pass of Attention (sparse=None path, eval mode).
# ---------------------------------------------------------------------------
def attention_forward(x, params, *, n_head, n_embd, q_len, win_len, scale):
    B, T, E = x.shape
    H = n_head
    HE = H * E
    assert E == n_embd and T <= win_len

    w_v, b_v, w_qk_conv, b_qk, w_p, b_p = params

    # value = Conv1D(rf=1): (B*T, E) @ (E, H*E) + b
    value = linear_pallas(x.reshape(B * T, E), w_v, b_v).reshape(B, T, HE)

    # query_key = causal Conv1d(kernel=q_len), taps folded inside the kernel.
    qk = causal_conv1d_pallas(x, w_qk_conv, b_qk)              # (B, T, 2*H*E)

    # split_heads (XLA layout plumbing) -> (B*H, T, E) per-head blocks.
    # TODO(synk): when E is a multiple of 128 these transposes can be folded
    # into the projection kernels' output BlockSpecs instead.
    qkh = qk.reshape(B, T, 2, H, E).transpose(2, 0, 3, 1, 4)   # (2, B, H, T, E)
    q_h = qkh[0].reshape(B * H, T, E)
    k_h = qkh[1].reshape(B * H, T, E)
    v_h = value.reshape(B, T, H, E).transpose(0, 2, 1, 3).reshape(B * H, T, E)

    # Fused causal flash attention.
    a = flash_attention_pallas(q_h, k_h, v_h, scale=scale)     # (B*H, T, E)

    # merge_heads + c_proj.
    a = a.reshape(B, H, T, E).transpose(0, 2, 1, 3).reshape(B * T, HE)
    out = linear_pallas(a, w_p, b_p).reshape(B, T, E)
    return out


# ---------------------------------------------------------------------------
# Pure-JAX reference (same math as the torch module) for sanity checking.
# ---------------------------------------------------------------------------
def attention_reference(x, params, *, n_head, n_embd, q_len, win_len, scale):
    B, T, E = x.shape
    H = n_head
    w_v, b_v, w_qk_conv, b_qk, w_p, b_p = params

    value = x.reshape(B * T, E) @ w_v + b_v
    value = value.reshape(B, T, E * H)

    x_pad = jnp.pad(x, ((0, 0), (q_len - 1, 0), (0, 0)))
    x_unf = jnp.concatenate([x_pad[:, j:j + T, :] for j in range(q_len)], axis=-1)
    w_qk_flat = jnp.transpose(w_qk_conv, (2, 1, 0)).reshape(q_len * E, 2 * E * H)
    qk = x_unf.reshape(B * T, q_len * E) @ w_qk_flat + b_qk
    qk = qk.reshape(B, T, 2 * E * H)

    query = qk[..., :E * H]
    key = qk[..., E * H:]
    q = query.reshape(B, T, H, E).transpose(0, 2, 1, 3)
    k = key.reshape(B, T, H, E).transpose(0, 2, 1, 3)
    v = value.reshape(B, T, H, E).transpose(0, 2, 1, 3)

    s = jnp.einsum('bhte,bhse->bhts', q, k)
    if scale:
        s = s / math.sqrt(E)
    mask = jnp.tril(jnp.ones((win_len, win_len), jnp.float32))[:T, :T]
    s = s * mask + NEG_MASK * (1.0 - mask)
    p = jax.nn.softmax(s, axis=-1)
    a = jnp.einsum('bhts,bhse->bhte', p, v)
    a = a.transpose(0, 2, 1, 3).reshape(B, T, H * E)
    out = a.reshape(B * T, H * E) @ w_p + b_p
    return out.reshape(B, T, E)


if __name__ == "__main__":
    # Small, module-consistent shapes.
    B, T = 2, 8
    n_head, n_embd = 2, 32
    win_len, q_len, sub_len = 8, 2, 4
    scale = True
    E, H = n_embd, n_head

    key = jax.random.PRNGKey(0)
    k_v, k_qk, k_p, k_x = jax.random.split(key, 4)

    # Deterministic parameter init (shapes from the module __init__).
    w_v = 0.02 * jax.random.normal(k_v, (E, E * H), jnp.float32)            # Conv1D value
    b_v = jnp.zeros((E * H,), jnp.float32)
    w_qk_conv = 0.02 * jax.random.normal(k_qk, (2 * E * H, E, q_len),
                                         jnp.float32)                       # nn.Conv1d weight
    b_qk = jnp.zeros((2 * E * H,), jnp.float32)
    w_p = 0.02 * jax.random.normal(k_p, (E * H, E), jnp.float32)            # Conv1D c_proj
    b_p = jnp.zeros((E,), jnp.float32)
    params = (w_v, b_v, w_qk_conv, b_qk, w_p, b_p)

    x = jax.random.normal(k_x, (B, T, E), jnp.float32)

    out = attention_forward(x, params, n_head=n_head, n_embd=n_embd,
                            q_len=q_len, win_len=win_len, scale=scale)
    out = jax.block_until_ready(out)

    ref = attention_reference(x, params, n_head=n_head, n_embd=n_embd,
                              q_len=q_len, win_len=win_len, scale=scale)
    ref = jax.block_until_ready(ref)

    assert out.shape == (B, T, n_embd)
    max_diff = float(jnp.max(jnp.abs(out - ref)))
    # bf16 MXU operands + approx reciprocal => allow a slightly looser (but
    # still tight for these magnitudes) absolute tolerance.
    if not np.isfinite(max_diff) or max_diff > 2e-2:
        raise RuntimeError(f"Pallas result mismatch: max |diff| = {max_diff}")

    print("KERNEL_OK")
</pallas_src>

<mosaic_0001>
module attributes {stable_mosaic.version = 11 : i64} {
  func.func @_matmul_bias_kernel(%arg0: i32, %arg1: i32, %arg2: i32, %arg3: memref<16x128xf32, #tpu.memory_space<vmem>>, %arg4: memref<128x128xf32, #tpu.memory_space<vmem>>, %arg5: memref<1x128xf32, #tpu.memory_space<vmem>>, %arg6: memref<16x128xf32, #tpu.memory_space<vmem>>, %arg7: memref<16x128xf32, #tpu.memory_space<vmem>>) attributes {dimension_semantics = [#tpu.dimension_semantics<parallel>, #tpu.dimension_semantics<parallel>, #tpu.dimension_semantics<arbitrary>], iteration_bounds = array<i64: 1, 1, 1>, scalar_prefetch = 0 : i64, scratch_operands = 1 : i64, tpu.core_type = #tpu.core_type<tc>, window_params = [{transform_indices = @transform_0, window_bounds = array<i64: 16, 128>}, {transform_indices = @transform_1, window_bounds = array<i64: 128, 128>}, {transform_indices = @transform_2, window_bounds = array<i64: 1, 128>}, {transform_indices = @transform_3, window_bounds = array<i64: 16, 128>}]} {
    %c0_i32 = arith.constant 0 : i32
    %0 = arith.cmpi eq, %arg2, %c0_i32 : i32
    %1 = arith.extui %0 : i1 to i32
    %c0_i32_0 = arith.constant 0 : i32
    %2 = arith.cmpi ne, %1, %c0_i32_0 : i32
    scf.if %2 {
      %c0_10 = arith.constant 0 : index
      %c0_11 = arith.constant 0 : index
      %14 = vector.load %arg5[%c0_10, %c0_11] : memref<1x128xf32, #tpu.memory_space<vmem>>, vector<1x128xf32>
      %15 = vector.shape_cast %14 : vector<1x128xf32> to vector<1x128xf32>
      %16 = vector.broadcast %15 : vector<1x128xf32> to vector<16x128xf32>
      %c0_12 = arith.constant 0 : index
      %c0_13 = arith.constant 0 : index
      %17 = vector.load %arg7[%c0_12, %c0_13] : memref<16x128xf32, #tpu.memory_space<vmem>>, vector<16x128xf32>
      tpu.vector_store %arg7[%c0_12, %c0_13], %16 {strides = array<i32>} : memref<16x128xf32, #tpu.memory_space<vmem>>, vector<16x128xf32>,
    } else {
    }
    %c0 = arith.constant 0 : index
    %c0_1 = arith.constant 0 : index
    %3 = vector.load %arg7[%c0, %c0_1] : memref<16x128xf32, #tpu.memory_space<vmem>>, vector<16x128xf32>
    %c0_2 = arith.constant 0 : index
    %c0_3 = arith.constant 0 : index
    %4 = vector.load %arg3[%c0_2, %c0_3] : memref<16x128xf32, #tpu.memory_space<vmem>>, vector<16x128xf32>
    %5 = arith.truncf %4 : vector<16x128xf32> to vector<16x128xbf16>
    %c0_4 = arith.constant 0 : index
    %c0_5 = arith.constant 0 : index
    %6 = vector.load %arg4[%c0_4, %c0_5] : memref<128x128xf32, #tpu.memory_space<vmem>>, vector<128x128xf32>
    %7 = arith.truncf %6 : vector<128x128xf32> to vector<128x128xbf16>
    %cst = arith.constant dense<0.000000e+00> : vector<16x128xf32>
    %8 = tpu.matmul %5, %7, %cst {dimension_numbers = #tpu.dot_dimension_numbers<[1], [0], [0], [1], [0, 0, 1, 1], [], []>} : vector<16x128xbf16>, vector<128x128xbf16>, vector<16x128xf32> -> vector<16x128xf32>
    %9 = arith.addf %3, %8 : vector<16x128xf32>
    %c0_6 = arith.constant 0 : index
    %c0_7 = arith.constant 0 : index
    %10 = vector.load %arg7[%c0_6, %c0_7] : memref<16x128xf32, #tpu.memory_space<vmem>>, vector<16x128xf32>
    tpu.vector_store %arg7[%c0_6, %c0_7], %9 {strides = array<i32>} : memref<16x128xf32, #tpu.memory_space<vmem>>, vector<16x128xf32>,
    %c0_i32_8 = arith.constant 0 : i32
    %11 = arith.cmpi eq, %arg2, %c0_i32_8 : i32
    %12 = arith.extui %11 : i1 to i32
    %c0_i32_9 = arith.constant 0 : i32
    %13 = arith.cmpi ne, %12, %c0_i32_9 : i32
    scf.if %13 {
      %c0_10 = arith.constant 0 : index
      %c0_11 = arith.constant 0 : index
      %14 = vector.load %arg7[%c0_10, %c0_11] : memref<16x128xf32, #tpu.memory_space<vmem>>, vector<16x128xf32>
      %c0_12 = arith.constant 0 : index
      %c0_13 = arith.constant 0 : index
      %15 = vector.load %arg6[%c0_12, %c0_13] : memref<16x128xf32, #tpu.memory_space<vmem>>, vector<16x128xf32>
      tpu.vector_store %arg6[%c0_12, %c0_13], %14 {strides = array<i32>} : memref<16x128xf32, #tpu.memory_space<vmem>>, vector<16x128xf32>,
    } else {
    }
    return
  }
  func.func @transform_0(%arg0: i32, %arg1: i32, %arg2: i32) -> (i32, i32) {
    %c0_i32 = arith.constant 0 : i32
    return %arg0, %arg2 : i32, i32
  }
  func.func @transform_1(%arg0: i32, %arg1: i32, %arg2: i32) -> (i32, i32) {
    %c0_i32 = arith.constant 0 : i32
    return %arg2, %arg1 : i32, i32
  }
  func.func @transform_2(%arg0: i32, %arg1: i32, %arg2: i32) -> (i32, i32) {
    %c0_i32 = arith.constant 0 : i32
    %c0_i32_0 = arith.constant 0 : i32
    return %c0_i32, %arg1 : i32, i32
  }
  func.func @transform_3(%arg0: i32, %arg1: i32, %arg2: i32) -> (i32, i32) {
    %c0_i32 = arith.constant 0 : i32
    return %arg0, %arg1 : i32, i32
  }
}

</mosaic_0001>

<bundles_post_ra>
// kernel: tpu_custom_call.1
= control target key start
LH: loop header
LB: loop body
LE: loop exit
PB: predicated region body
PF: predicated region fallthrough
CT: control target
= control target key end

     0   :  { %8 = vsyncpa [#allocation4], 0  ;;  %s340_s0 = inlined_call_operand.hbm [shape: f32[16,128], index: 0, kind: input, shape index: {}]   ;;  %s341_s1 = inlined_call_operand.hbm [shape: f32[128,128], index: 1, kind: input, shape index: {}]   ;;  %s342_s2 = inlined_call_operand.vmem [shape: f32[1,128], index: 2, kind: input, shape index: {}]   ;;  %s343_s3 = inlined_call_operand.hbm [shape: f32[16,128], index: 3, kind: output, shape index: {}]  }
   0x1   :  { %9 = vsyncpa [#allocation7], 0 }
   0x2   :  { %10 = vsyncpa [#allocation5], 0  ;;  %s265_s12 = smov [#allocation3]   ;;  %s193_s16 = scalar_lea.hbm %s340_s0, 256 }
   0x3   :  { %s16_s13 = sshll.u32 %s265_s12, 4  ;;  %p194_p0 = scmp.ne.s32.totalorder %s340_s0, %s193_s16  ;;  %s17_s13 = int_to_ptr.vmem [resolvable:$true] %s16_s13 }
   0x4   :  { %p197_p1 = scmp.lt.u32.totalorder %s193_s16, %s340_s0 }
   0x6   :  { %p199_p2 = pnand %p197_p1, %p194_p0 }
   0x8   :  { %202 = shalt.err (!%p199_p2)
}
   0x9   :  { %s203_s21 = scalar_lea.vmem %s17_s13, 256  ;;  %p208_p4 = scmp.lt.s32.totalorder %s17_s13, %s17_s13 }
   0xa   :  { %p204_p3 = scmp.ne.s32.totalorder %s17_s13, %s203_s21  ;;  %p209_p5 = scmp.lt.s32.totalorder %s203_s21, %s203_s21 }
   0xc   :  { %p210_p6 = por %p209_p5, %p208_p4 }
   0xe   :  { %p211_p7 = pnand %p210_p6, %p204_p3 }
  0x10   :  { %214 = shalt.err (!%p211_p7)
}
  0x11   :  { %s266_s22 = smov 128   ;;  %s267_s23 = smov 8  }
  0x12   :  { %22 = dma.hbm_to_vmem [thread:$0]  %s340_s0, 256, %s17_s13, [#allocation4], %s266_s22, %s266_s22, %s267_s23  }
  0x13   :  { %s268_s26 = smov [#allocation6]   ;;  %s215_s30 = scalar_lea.hbm %s341_s1, 2048 }
  0x14   :  { %s28_s27 = sshll.u32 %s268_s26, 4  ;;  %p216_p8 = scmp.ne.s32.totalorder %s341_s1, %s215_s30  ;;  %s29_s27 = int_to_ptr.vmem [resolvable:$true] %s28_s27 }
  0x15   :  { %p219_p9 = scmp.lt.u32.totalorder %s215_s30, %s341_s1 }
  0x17   :  { %p221_p10 = pnand %p219_p9, %p216_p8 }
  0x19   :  { %224 = shalt.err (!%p221_p10)
}
  0x1a   :  { %s225_s8 = scalar_lea.vmem %s29_s27, 2048  ;;  %p230_p12 = scmp.lt.s32.totalorder %s29_s27, %s29_s27 }
  0x1b   :  { %p226_p11 = scmp.ne.s32.totalorder %s29_s27, %s225_s8  ;;  %p231_p13 = scmp.lt.s32.totalorder %s225_s8, %s225_s8 }
  0x1d   :  { %p232_p0 = por %p231_p13, %p230_p12 }
  0x1f   :  { %p233_p1 = pnand %p232_p0, %p226_p11 }
  0x21   :  { %236 = shalt.err (!%p233_p1)
}
  0x22   :  { %34 = dma.hbm_to_vmem [thread:$0]  %s341_s1, 2048, %s29_s27, [#allocation7], %s266_s22, %s266_s22, %s267_s23  }
  0x23   :  { %259 = dma.done.wait [#allocation4], 256  }
  0x24   :  { %260 = vsyncadd [#allocation4], 4294967040 }
  0x25   :  { %261 = dma.done.wait [#allocation7], 2048  }
  0x26   :  { %262 = vsyncadd [#allocation7], 4294965248  ;;  %v269_v0 = vmov 0.0   ;;  %vm270_vm0 = vmmov 0   ;;  %v62_v1 = vld [vmem:[#allocation6] sm:$0xff]  ;;  %v63_v2 = vld [vmem:[#allocation6 + $0x8] sm:$0xff] }
  0x27   :  { %166 = vmatprep.subr.bf16.mxu0 %v269_v0  ;;  %182 = vmatprep.mubr.msk.bf16.mxu0 %vm270_vm0, %v269_v0  ;;  %v64_v3 = vld [vmem:[#allocation6 + $0x10] sm:$0xff]  ;;  %v78_v4 = vpack.c.bf16 %v63_v2, %v62_v1  ;;  %v65_v5 = vld [vmem:[#allocation6 + $0x18] sm:$0xff]  ;;  %v66_v7 = vld [vmem:[#allocation6 + $0x20] sm:$0xff]  ;;  %s271_s11 = smov [#allocation8]  }
  0x28   :  { %v79_v6 = vpack.c.bf16 %v65_v5, %v64_v3  ;;  %v67_v8 = vld [vmem:[#allocation6 + $0x28] sm:$0xff]  ;;  %v68_v10 = vld [vmem:[#allocation6 + $0x30] sm:$0xff]  ;;  %v69_v11 = vld [vmem:[#allocation6 + $0x38] sm:$0xff]  ;;  %s143_s12 = sshll.u32 %s271_s11, 4  ;;  %s144_s12 = int_to_ptr.vmem [resolvable:$true] %s143_s12 }
  0x29   :  { %167 = vmatpush3.bf16.msra.mxu0 %v78_v4  ;;  %v80_v9 = vpack.c.bf16 %v67_v8, %v66_v7  ;;  %v81_v12 = vpack.c.bf16 %v69_v11, %v68_v10  ;;  %v70_v13 = vld [vmem:[#allocation6 + $0x40] sm:$0xff]  ;;  %v71_v14 = vld [vmem:[#allocation6 + $0x48] sm:$0xff]  ;;  %v72_v16 = vld [vmem:[#allocation6 + $0x50] sm:$0xff]  ;;  %s237_s13 = scalar_lea.vmem %s144_s12, 256  ;;  %p242_p3 = scmp.lt.s32.totalorder %s144_s12, %s144_s12 }
  0x2a   :  { %168 = vmatprep.subr.bf16.mxu0 %v269_v0  ;;  %v82_v15 = vpack.c.bf16 %v71_v14, %v70_v13  ;;  %v73_v17 = vld [vmem:[#allocation6 + $0x58] sm:$0xff]  ;;  %v74_v19 = vld [vmem:[#allocation6 + $0x60] sm:$0xff]  ;;  %v75_v20 = vld [vmem:[#allocation6 + $0x68] sm:$0xff]  ;;  %p238_p2 = scmp.ne.s32.totalorder %s144_s12, %s237_s13  ;;  %p243_p4 = scmp.lt.s32.totalorder %s237_s13, %s237_s13 }
  0x2b   :  { %v83_v18 = vpack.c.bf16 %v73_v17, %v72_v16  ;;  %v84_v21 = vpack.c.bf16 %v75_v20, %v74_v19  ;;  %v76_v22 = vld [vmem:[#allocation6 + $0x70] sm:$0xff]  ;;  %v77_v23 = vld [vmem:[#allocation6 + $0x78] sm:$0xff] }
  0x2c   :  { %v85_v24 = vpack.c.bf16 %v77_v23, %v76_v22  ;;  %v59_v25 = vld [vmem:[#allocation3] sm:$0xff]  ;;  %v60_v26 = vld [vmem:[#allocation3 + $0x8] sm:$0xff]  ;;  %p244_p5 = por %p243_p4, %p242_p3 }
  0x2d   :  { %169 = vmatpush3.bf16.msra.mxu0 %v79_v6  ;;  %v61_v27 = vpack.c.bf16 %v60_v26, %v59_v25  ;;  %v156_v28 = vld [vmem:[%s342_s2] ss:$0 sm:$0xff] }
  0x2e   :  { %170 = vmatprep.subr.bf16.mxu0 %v269_v0  ;;  %p245_p6 = pnand %p244_p5, %p238_p2 }
  0x31   :  { %171 = vmatpush3.bf16.msra.mxu0 %v80_v9 }
  0x32   :  { %172 = vmatprep.subr.bf16.mxu0 %v269_v0 }
  0x35   :  { %173 = vmatpush3.bf16.msra.mxu0 %v81_v12 }
  0x36   :  { %174 = vmatprep.subr.bf16.mxu0 %v269_v0 }
  0x39   :  { %175 = vmatpush3.bf16.msra.mxu0 %v82_v15 }
  0x3a   :  { %176 = vmatprep.subr.bf16.mxu0 %v269_v0 }
  0x3d   :  { %177 = vmatpush3.bf16.msra.mxu0 %v83_v18 }
  0x3e   :  { %178 = vmatprep.subr.bf16.mxu0 %v269_v0 }
  0x41   :  { %179 = vmatpush3.bf16.msra.mxu0 %v84_v21 }
  0x42   :  { %180 = vmatprep.subr.bf16.mxu0 %v269_v0 }
  0x45   :  { %181 = vmatpush3.bf16.msra.mxu0 %v85_v24 }
  0x48   :  { %183 = vmatmul.mubr.bf16.vlgmr.msra.gmra.mrb[0].mxu0 %v61_v27 }
 0x11b   :  { %v120_v29 = vpop.f32.mrb[0].mxu0 }
 0x11c   :  { %v127_v30 = vadd.f32 %v156_v28, %v120_v29  ;;  %v184_v31 = vpop.f32.mrb[1].mxu0 }
 0x11d   :  { %v123_v32 = vpop.f32.mrb[2].mxu0 }
 0x11e   :  { %136 = vst [vmem:[#allocation8] sm:$0xff] %v127_v30  ;;  %v128_v33 = vadd.f32 %v156_v28, %v123_v32  ;;  %v185_v34 = vpop.f32.mrb[3].mxu0 }
 0x120   :  { %137 = vst [vmem:[#allocation8 + $0x8] sm:$0xff] %v128_v33 }
 0x121   :  { %248 = shalt.err (!%p245_p6)
}
 0x122   :  { %s249_s15 = scalar_lea.hbm %s343_s3, 256 }
 0x123   :  { %p250_p7 = scmp.ne.s32.totalorder %s343_s3, %s249_s15  ;;  %p253_p8 = scmp.lt.u32.totalorder %s249_s15, %s343_s3 }
 0x125   :  { %p255_p9 = pnand %p253_p8, %p250_p7 }
 0x127   :  { %258 = shalt.err (!%p255_p9)
}
 0x128   :  { %149 = dma.vmem_to_hbm [thread:$0]  %s144_s12, 256, %s343_s3, [#allocation5], %s266_s22, %s266_s22, %s267_s23  }
 0x129   :  { %263 = dma.done.wait [#allocation5], 256  }
 0x12a   :  { %264 = vsyncadd [#allocation5], 4294967040 }
 0x12b   :  { %153 = vsyncpa [#allocation4], 1 }
 0x12c   :  { %154 = vsyncpa [#allocation7], 1 }
 0x12d   :  { %155 = vsyncpa [#allocation5], 1 }

</bundles_post_ra>
